<compile_context>
chip_gen: v7x
topology: tpu7x:2x2x1
jax: 0.10.0
libtpu: 0.0.40
codegen_flags: <defaults>
</compile_context>

<pallas_src>
import functools
import math

import jax
import jax.numpy as jnp
from jax.experimental import pallas as pl
from jax.experimental.pallas import tpu as pltpu


# ----------------------------------------------------------------------------
# Fused kernel: kv_mapper + (RMSNorm -> cross-attn -> +residual) x 2
# ----------------------------------------------------------------------------
def _fused_block_kernel(hs_ref, encr_ref, kvw_ref, kvb_ref,
                        g1_ref, wq1_ref, wkv1_ref, wo1_ref, bo1_ref,
                        g2_ref, wq2_ref, wkv2_ref, wo2_ref, bo2_ref,
                        out_ref, *, num_heads, head_dim, eps):
    H, dh = num_heads, head_dim
    hs = hs_ref[0].astype(jnp.float32)            # (Sq, D)
    enc_raw = encr_ref[0].astype(jnp.float32)     # (Skv, Dkv)
    Sq, D = hs.shape
    Skv = enc_raw.shape[0]
    scale = 1.0 / math.sqrt(dh)

    # ---- kv_mapper: Linear(silu(encoder_hidden_states)) --------------------
    x = enc_raw * jax.nn.sigmoid(enc_raw)
    enc = jnp.dot(x, kvw_ref[...],
                  preferred_element_type=jnp.float32) + kvb_ref[...]    # (Skv, D)
    # Hoisted head-broadcast of enc, shared by both attention blocks.
    enc_b = jnp.broadcast_to(enc[None], (2 * H, Skv, D))

    def rmsnorm_attn_residual(h_in, g_ref, wq_ref, wkv_ref, wo_ref, bo_ref):
        # RMSNorm(dim, eps) with learnable gamma.
        var = jnp.mean(h_in * h_in, axis=-1, keepdims=True)
        normed = h_in * jax.lax.rsqrt(var + eps) * g_ref[...]           # (Sq, D)

        # q projection, batched over heads: (H,Sq,D) @ (H,D,dh) -> (H,Sq,dh)
        normed_b = jnp.broadcast_to(normed[None], (H, Sq, D))
        qh = jnp.einsum('hsd,hde->hse', normed_b, wq_ref[...],
                        preferred_element_type=jnp.float32)
        # fused k|v projection: (2H,Skv,D) @ (2H,D,dh) -> (2H,Skv,dh)
        kvh = jnp.einsum('hsd,hde->hse', enc_b, wkv_ref[...],
                         preferred_element_type=jnp.float32)
        kh, vh = kvh[:H], kvh[H:]                 # major-dim slices, no lane masking

        # softmax(q k^T / sqrt(dh)) v — all heads batched, no explicit .T
        s = jnp.einsum('hqd,hkd->hqk', qh, kh,
                       preferred_element_type=jnp.float32) * scale
        s = s - jnp.max(s, axis=-1, keepdims=True)
        p = jnp.exp(s)
        p = p * pl.reciprocal(jnp.sum(p, axis=-1, keepdims=True), approx=True)
        o = jnp.einsum('hqk,hkd->hqd', p, vh,
                       preferred_element_type=jnp.float32)              # (H,Sq,dh)

        # output projection (bias), summed over heads, + residual with h_in
        outh = jnp.einsum('hqd,hdk->hqk', o, wo_ref[...],
                          preferred_element_type=jnp.float32)           # (H,Sq,D)
        return jnp.sum(outh, axis=0) + bo_ref[...] + h_in

    h1 = rmsnorm_attn_residual(hs, g1_ref, wq1_ref, wkv1_ref, wo1_ref, bo1_ref)
    h2 = rmsnorm_attn_residual(h1, g2_ref, wq2_ref, wkv2_ref, wo2_ref, bo2_ref)
    out_ref[0] = h2.astype(out_ref.dtype)
    # TODO(synk): dropout is p=0.0 in this module config -> identity, omitted.


# ----------------------------------------------------------------------------
# Full module wrapper (single pallas_call, host-side weight re-layout)
# ----------------------------------------------------------------------------
def skip_ff_transformer_block(hidden_states, encoder_hidden_states, params,
                              *, num_heads, head_dim, eps=1e-6):
    B, Sq, D = hidden_states.shape
    _, Skv, Dkv = encoder_hidden_states.shape
    H, dh = num_heads, head_dim

    def split_heads(w):                           # (D, H*dh) -> (H, D, dh)
        return w.reshape(D, H, dh).transpose(1, 0, 2)

    wq1 = split_heads(params["a1_wq"])
    wkv1 = jnp.concatenate([split_heads(params["a1_wk"]),
                            split_heads(params["a1_wv"])], axis=0)      # (2H,D,dh)
    wo1 = params["a1_wo"].reshape(H, dh, D)
    wq2 = split_heads(params["a2_wq"])
    wkv2 = jnp.concatenate([split_heads(params["a2_wk"]),
                            split_heads(params["a2_wv"])], axis=0)
    wo2 = params["a2_wo"].reshape(H, dh, D)

    kern = functools.partial(_fused_block_kernel, num_heads=H, head_dim=dh,
                             eps=eps)

    in_specs = [
        pl.BlockSpec((1, Sq, D), lambda i: (i, 0, 0)),        # hidden_states
        pl.BlockSpec((1, Skv, Dkv), lambda i: (i, 0, 0)),     # encoder_hidden_states
        pl.BlockSpec((Dkv, D), lambda i: (0, 0)),             # kv_mapper W
        pl.BlockSpec((1, D), lambda i: (0, 0)),               # kv_mapper b
        pl.BlockSpec((1, D), lambda i: (0, 0)),               # norm1 gamma
        pl.BlockSpec((H, D, dh), lambda i: (0, 0, 0)),        # attn1 Wq (head-split)
        pl.BlockSpec((2 * H, D, dh), lambda i: (0, 0, 0)),    # attn1 Wk|Wv fused
        pl.BlockSpec((H, dh, D), lambda i: (0, 0, 0)),        # attn1 Wo (head-split)
        pl.BlockSpec((1, D), lambda i: (0, 0)),               # attn1 out bias
        pl.BlockSpec((1, D), lambda i: (0, 0)),               # norm2 gamma
        pl.BlockSpec((H, D, dh), lambda i: (0, 0, 0)),        # attn2 Wq
        pl.BlockSpec((2 * H, D, dh), lambda i: (0, 0, 0)),    # attn2 Wk|Wv
        pl.BlockSpec((H, dh, D), lambda i: (0, 0, 0)),        # attn2 Wo
        pl.BlockSpec((1, D), lambda i: (0, 0)),               # attn2 out bias
    ]

    return pl.pallas_call(
        kern,
        out_shape=jax.ShapeDtypeStruct((B, Sq, D), hidden_states.dtype),
        grid=(B,),
        in_specs=in_specs,
        out_specs=pl.BlockSpec((1, Sq, D), lambda i: (i, 0, 0)),
        compiler_params=pltpu.CompilerParams(
            dimension_semantics=("parallel",)),   # v7x: batch shards over 2 TCs
    )(hidden_states, encoder_hidden_states, params["kv_w"], params["kv_b"],
      params["norm1_g"], wq1, wkv1, wo1, params["a1_bo"],
      params["norm2_g"], wq2, wkv2, wo2, params["a2_bo"])


# ----------------------------------------------------------------------------
# Pure-JAX reference (for sanity check)
# ----------------------------------------------------------------------------
def _ref_forward(hs, enc_in, p, num_heads, head_dim):
    def rms(x, g):
        var = jnp.mean(x * x, axis=-1, keepdims=True)
        return x * jax.lax.rsqrt(var + 1e-6) * g

    def attn(x, enc, wq, wk, wv, wo, bo):
        B, Sq, D = x.shape
        q = x @ wq
        k = enc @ wk
        v = enc @ wv
        q = q.reshape(B, Sq, num_heads, head_dim).transpose(0, 2, 1, 3)
        k = k.reshape(B, -1, num_heads, head_dim).transpose(0, 2, 1, 3)
        v = v.reshape(B, -1, num_heads, head_dim).transpose(0, 2, 1, 3)
        s = jnp.einsum("bhqd,bhkd->bhqk", q, k) / math.sqrt(head_dim)
        pmat = jax.nn.softmax(s, axis=-1)
        o = jnp.einsum("bhqk,bhkd->bhqd", pmat, v)
        o = o.transpose(0, 2, 1, 3).reshape(B, Sq, num_heads * head_dim)
        return o @ wo + bo

    enc = jax.nn.silu(enc_in) @ p["kv_w"] + p["kv_b"]
    h = attn(rms(hs, p["norm1_g"]), enc, p["a1_wq"], p["a1_wk"], p["a1_wv"],
             p["a1_wo"], p["a1_bo"]) + hs
    h = attn(rms(h, p["norm2_g"]), enc, p["a2_wq"], p["a2_wk"], p["a2_wv"],
             p["a2_wo"], p["a2_bo"]) + h
    return h


# ----------------------------------------------------------------------------
if __name__ == "__main__":
    # Module config (small): dim=32, heads=2, head_dim=16, kv_input_dim=48
    B, Sq, Skv = 2, 8, 8
    dim, num_heads, head_dim, kv_dim = 32, 2, 16, 48
    inner = num_heads * head_dim

    key = jax.random.PRNGKey(0)
    ks = jax.random.split(key, 16)

    hidden_states = jax.random.normal(ks[0], (B, Sq, dim), jnp.float32)
    encoder_hidden_states = jax.random.normal(ks[1], (B, Skv, kv_dim), jnp.float32)

    def init(k, shape, scale=0.05):
        return scale * jax.random.normal(k, shape, jnp.float32)

    params = {
        # kv_mapper: Linear(kv_dim -> dim, bias=True)  (stored (in, out))
        "kv_w": init(ks[2], (kv_dim, dim)),
        "kv_b": init(ks[3], (1, dim)),
        # RMSNorm weights (torch init is ones; perturbed deterministically)
        "norm1_g": jnp.ones((1, dim), jnp.float32) + init(ks[4], (1, dim)),
        "norm2_g": jnp.ones((1, dim), jnp.float32) + init(ks[5], (1, dim)),
        # attn1
        "a1_wq": init(ks[6], (dim, inner)),
        "a1_wk": init(ks[7], (dim, inner)),
        "a1_wv": init(ks[8], (dim, inner)),
        "a1_wo": init(ks[9], (inner, dim)),
        "a1_bo": init(ks[10], (1, dim)),
        # attn2
        "a2_wq": init(ks[11], (dim, inner)),
        "a2_wk": init(ks[12], (dim, inner)),
        "a2_wv": init(ks[13], (dim, inner)),
        "a2_wo": init(ks[14], (inner, dim)),
        "a2_bo": init(ks[15], (1, dim)),
    }

    out = skip_ff_transformer_block(hidden_states, encoder_hidden_states, params,
                                    num_heads=num_heads, head_dim=head_dim)
    out = jax.block_until_ready(out)

    ref = _ref_forward(hidden_states, encoder_hidden_states, params,
                       num_heads, head_dim)
    assert out.shape == (B, Sq, dim)
    # Tolerance slightly loosened vs. 1e-4 because the softmax denominator uses
    # the EUP approximate reciprocal (pl.reciprocal(..., approx=True)).
    assert jnp.allclose(out, ref, atol=2e-3, rtol=2e-3), "mismatch vs reference"

    print("KERNEL_OK")
</pallas_src>

<mosaic_0001>
module attributes {stable_mosaic.version = 11 : i64} {
  func.func @_fused_block_kernel(%arg0: i32, %arg1: memref<1x8x32xf32, #tpu.memory_space<vmem>>, %arg2: memref<1x8x48xf32, #tpu.memory_space<vmem>>, %arg3: memref<48x32xf32, #tpu.memory_space<vmem>>, %arg4: memref<1x32xf32, #tpu.memory_space<vmem>>, %arg5: memref<1x32xf32, #tpu.memory_space<vmem>>, %arg6: memref<2x32x16xf32, #tpu.memory_space<vmem>>, %arg7: memref<4x32x16xf32, #tpu.memory_space<vmem>>, %arg8: memref<2x16x32xf32, #tpu.memory_space<vmem>>, %arg9: memref<1x32xf32, #tpu.memory_space<vmem>>, %arg10: memref<1x32xf32, #tpu.memory_space<vmem>>, %arg11: memref<2x32x16xf32, #tpu.memory_space<vmem>>, %arg12: memref<4x32x16xf32, #tpu.memory_space<vmem>>, %arg13: memref<2x16x32xf32, #tpu.memory_space<vmem>>, %arg14: memref<1x32xf32, #tpu.memory_space<vmem>>, %arg15: memref<1x8x32xf32, #tpu.memory_space<vmem>>) attributes {dimension_semantics = [#tpu.dimension_semantics<parallel>], iteration_bounds = array<i64: 2>, scalar_prefetch = 0 : i64, scratch_operands = 0 : i64, tpu.core_type = #tpu.core_type<tc>, window_params = [{transform_indices = @transform_0, window_bounds = array<i64: 1, 8, 32>}, {transform_indices = @transform_1, window_bounds = array<i64: 1, 8, 48>}, {pipeline_mode = #tpu.pipeline_mode<synchronous>, transform_indices = @transform_2, window_bounds = array<i64: 48, 32>}, {pipeline_mode = #tpu.pipeline_mode<synchronous>, transform_indices = @transform_3, window_bounds = array<i64: 1, 32>}, {pipeline_mode = #tpu.pipeline_mode<synchronous>, transform_indices = @transform_4, window_bounds = array<i64: 1, 32>}, {pipeline_mode = #tpu.pipeline_mode<synchronous>, transform_indices = @transform_5, window_bounds = array<i64: 2, 32, 16>}, {pipeline_mode = #tpu.pipeline_mode<synchronous>, transform_indices = @transform_6, window_bounds = array<i64: 4, 32, 16>}, {pipeline_mode = #tpu.pipeline_mode<synchronous>, transform_indices = @transform_7, window_bounds = array<i64: 2, 16, 32>}, {pipeline_mode = #tpu.pipeline_mode<synchronous>, transform_indices = @transform_8, window_bounds = array<i64: 1, 32>}, {pipeline_mode = #tpu.pipeline_mode<synchronous>, transform_indices = @transform_9, window_bounds = array<i64: 1, 32>}, {pipeline_mode = #tpu.pipeline_mode<synchronous>, transform_indices = @transform_10, window_bounds = array<i64: 2, 32, 16>}, {pipeline_mode = #tpu.pipeline_mode<synchronous>, transform_indices = @transform_11, window_bounds = array<i64: 4, 32, 16>}, {pipeline_mode = #tpu.pipeline_mode<synchronous>, transform_indices = @transform_12, window_bounds = array<i64: 2, 16, 32>}, {pipeline_mode = #tpu.pipeline_mode<synchronous>, transform_indices = @transform_13, window_bounds = array<i64: 1, 32>}, {transform_indices = @transform_14, window_bounds = array<i64: 1, 8, 32>}]} {
    %c0 = arith.constant 0 : index
    %c0_0 = arith.constant 0 : index
    %c0_1 = arith.constant 0 : index
    %0 = vector.load %arg1[%c0, %c0_0, %c0_1] : memref<1x8x32xf32, #tpu.memory_space<vmem>>, vector<1x8x32xf32>
    %1 = vector.shape_cast %0 : vector<1x8x32xf32> to vector<8x32xf32>
    %c0_2 = arith.constant 0 : index
    %c0_3 = arith.constant 0 : index
    %c0_4 = arith.constant 0 : index
    %2 = vector.load %arg2[%c0_2, %c0_3, %c0_4] : memref<1x8x48xf32, #tpu.memory_space<vmem>>, vector<1x8x48xf32>
    %3 = vector.shape_cast %2 : vector<1x8x48xf32> to vector<8x48xf32>
    %4 = arith.negf %3 : vector<8x48xf32>
    %5 = math.exp %4 : vector<8x48xf32>
    %cst = arith.constant 1.000000e+00 : f32
    %6 = vector.broadcast %cst : f32 to vector<8x48xf32>
    %7 = arith.addf %6, %5 : vector<8x48xf32>
    %8 = arith.divf %6, %7 : vector<8x48xf32>
    %9 = arith.mulf %3, %8 : vector<8x48xf32>
    %c0_5 = arith.constant 0 : index
    %c0_6 = arith.constant 0 : index
    %10 = vector.load %arg3[%c0_5, %c0_6] : memref<48x32xf32, #tpu.memory_space<vmem>>, vector<48x32xf32>
    %cst_7 = arith.constant dense<0.000000e+00> : vector<8x32xf32>
    %11 = tpu.matmul %9, %10, %cst_7 {dimension_numbers = #tpu.dot_dimension_numbers<[1], [0], [0], [1], [0, 0, 1, 1], [], []>} : vector<8x48xf32>, vector<48x32xf32>, vector<8x32xf32> -> vector<8x32xf32>
    %c0_8 = arith.constant 0 : index
    %c0_9 = arith.constant 0 : index
    %12 = vector.load %arg4[%c0_8, %c0_9] : memref<1x32xf32, #tpu.memory_space<vmem>>, vector<1x32xf32>
    %13 = vector.broadcast %12 : vector<1x32xf32> to vector<8x32xf32>
    %14 = arith.addf %11, %13 : vector<8x32xf32>
    %15 = vector.shape_cast %14 : vector<8x32xf32> to vector<1x8x32xf32>
    %16 = vector.shape_cast %15 : vector<1x8x32xf32> to vector<1x8x32xf32>
    %17 = vector.broadcast %16 : vector<1x8x32xf32> to vector<4x8x32xf32>
    %18 = arith.mulf %1, %1 : vector<8x32xf32>
    %cst_10 = arith.constant dense<0.000000e+00> : vector<8xf32>
    %19 = vector.multi_reduction <add>, %18, %cst_10 [1] : vector<8x32xf32> to vector<8xf32>
    %20 = vector.shape_cast %19 : vector<8xf32> to vector<8x1xf32>
    %cst_11 = arith.constant 3.200000e+01 : f32
    %21 = vector.broadcast %cst_11 : f32 to vector<8x1xf32>
    %22 = arith.divf %20, %21 : vector<8x1xf32>
    %cst_12 = arith.constant 9.99999997E-7 : f32
    %23 = vector.broadcast %cst_12 : f32 to vector<8x1xf32>
    %24 = arith.addf %22, %23 : vector<8x1xf32>
    %25 = math.rsqrt %24 : vector<8x1xf32>
    %26 = vector.broadcast %25 : vector<8x1xf32> to vector<8x32xf32>
    %27 = arith.mulf %1, %26 : vector<8x32xf32>
    %c0_13 = arith.constant 0 : index
    %c0_14 = arith.constant 0 : index
    %28 = vector.load %arg5[%c0_13, %c0_14] : memref<1x32xf32, #tpu.memory_space<vmem>>, vector<1x32xf32>
    %29 = vector.broadcast %28 : vector<1x32xf32> to vector<8x32xf32>
    %30 = arith.mulf %27, %29 : vector<8x32xf32>
    %31 = vector.shape_cast %30 : vector<8x32xf32> to vector<1x8x32xf32>
    %32 = vector.shape_cast %31 : vector<1x8x32xf32> to vector<1x8x32xf32>
    %33 = vector.broadcast %32 : vector<1x8x32xf32> to vector<2x8x32xf32>
    %c0_15 = arith.constant 0 : index
    %c0_16 = arith.constant 0 : index
    %c0_17 = arith.constant 0 : index
    %34 = vector.load %arg6[%c0_15, %c0_16, %c0_17] : memref<2x32x16xf32, #tpu.memory_space<vmem>>, vector<2x32x16xf32>
    "tpu.trace_start"() <{level = 10 : i32, message = "hsd,hde->hse"}> : () -> ()
    %cst_18 = arith.constant dense<0.000000e+00> : vector<2x8x16xf32>
    %35 = tpu.matmul %33, %34, %cst_18 {dimension_numbers = #tpu.dot_dimension_numbers<[2], [1], [1], [2], [0, 0, 0, 1, 1, 2], [0], [0]>} : vector<2x8x32xf32>, vector<2x32x16xf32>, vector<2x8x16xf32> -> vector<2x8x16xf32>
    "tpu.trace_stop"() : () -> ()
    %c0_19 = arith.constant 0 : index
    %c0_20 = arith.constant 0 : index
    %c0_21 = arith.constant 0 : index
    %36 = vector.load %arg7[%c0_19, %c0_20, %c0_21] : memref<4x32x16xf32, #tpu.memory_space<vmem>>, vector<4x32x16xf32>
    "tpu.trace_start"() <{level = 10 : i32, message = "hsd,hde->hse"}> : () -> ()
    %cst_22 = arith.constant dense<0.000000e+00> : vector<4x8x16xf32>
    %37 = tpu.matmul %17, %36, %cst_22 {dimension_numbers = #tpu.dot_dimension_numbers<[2], [1], [1], [2], [0, 0, 0, 1, 1, 2], [0], [0]>} : vector<4x8x32xf32>, vector<4x32x16xf32>, vector<4x8x16xf32> -> vector<4x8x16xf32>
    "tpu.trace_stop"() : () -> ()
    %38 = vector.extract_strided_slice %37 {offsets = [0, 0, 0], sizes = [2, 8, 16], strides = [1, 1, 1]} : vector<4x8x16xf32> to vector<2x8x16xf32>
    %39 = vector.extract_strided_slice %37 {offsets = [2, 0, 0], sizes = [2, 8, 16], strides = [1, 1, 1]} : vector<4x8x16xf32> to vector<2x8x16xf32>
    "tpu.trace_start"() <{level = 10 : i32, message = "hqd,hkd->hqk"}> : () -> ()
    %cst_23 = arith.constant dense<0.000000e+00> : vector<2x8x8xf32>
    %40 = tpu.matmul %35, %38, %cst_23 {dimension_numbers = #tpu.dot_dimension_numbers<[2], [2], [1], [1], [0, 0, 0, 1, 1, 1], [0], [0]>} : vector<2x8x16xf32>, vector<2x8x16xf32>, vector<2x8x8xf32> -> vector<2x8x8xf32>
    "tpu.trace_stop"() : () -> ()
    %cst_24 = arith.constant 2.500000e-01 : f32
    %41 = vector.broadcast %cst_24 : f32 to vector<2x8x8xf32>
    %42 = arith.mulf %40, %41 : vector<2x8x8xf32>
    %cst_25 = arith.constant dense<0xFF800000> : vector<2x8xf32>
    %43 = vector.multi_reduction <maximumf>, %42, %cst_25 [2] : vector<2x8x8xf32> to vector<2x8xf32>
    %44 = vector.shape_cast %43 : vector<2x8xf32> to vector<2x8x1xf32>
    %45 = vector.broadcast %44 : vector<2x8x1xf32> to vector<2x8x8xf32>
    %46 = arith.subf %42, %45 : vector<2x8x8xf32>
    %47 = math.exp %46 : vector<2x8x8xf32>
    %cst_26 = arith.constant dense<0.000000e+00> : vector<2x8xf32>
    %48 = vector.multi_reduction <add>, %47, %cst_26 [2] : vector<2x8x8xf32> to vector<2x8xf32>
    %49 = vector.shape_cast %48 : vector<2x8xf32> to vector<2x8x1xf32>
    %50 = tpu.reciprocal %49 {approx = true} : vector<2x8x1xf32> -> vector<2x8x1xf32>
    %51 = vector.broadcast %50 : vector<2x8x1xf32> to vector<2x8x8xf32>
    %52 = arith.mulf %47, %51 : vector<2x8x8xf32>
    "tpu.trace_start"() <{level = 10 : i32, message = "hqk,hkd->hqd"}> : () -> ()
    %cst_27 = arith.constant dense<0.000000e+00> : vector<2x8x16xf32>
    %53 = tpu.matmul %52, %39, %cst_27 {dimension_numbers = #tpu.dot_dimension_numbers<[2], [1], [1], [2], [0, 0, 0, 1, 1, 2], [0], [0]>} : vector<2x8x8xf32>, vector<2x8x16xf32>, vector<2x8x16xf32> -> vector<2x8x16xf32>
    "tpu.trace_stop"() : () -> ()
    %c0_28 = arith.constant 0 : index
    %c0_29 = arith.constant 0 : index
    %c0_30 = arith.constant 0 : index
    %54 = vector.load %arg8[%c0_28, %c0_29, %c0_30] : memref<2x16x32xf32, #tpu.memory_space<vmem>>, vector<2x16x32xf32>
    "tpu.trace_start"() <{level = 10 : i32, message = "hqd,hdk->hqk"}> : () -> ()
    %cst_31 = arith.constant dense<0.000000e+00> : vector<2x8x32xf32>
    %55 = tpu.matmul %53, %54, %cst_31 {dimension_numbers = #tpu.dot_dimension_numbers<[2], [1], [1], [2], [0, 0, 0, 1, 1, 2], [0], [0]>} : vector<2x8x16xf32>, vector<2x16x32xf32>, vector<2x8x32xf32> -> vector<2x8x32xf32>
    "tpu.trace_stop"() : () -> ()
    %cst_32 = arith.constant dense<0.000000e+00> : vector<8x32xf32>
    %56 = vector.multi_reduction <add>, %55, %cst_32 [0] : vector<2x8x32xf32> to vector<8x32xf32>
    %c0_33 = arith.constant 0 : index
    %c0_34 = arith.constant 0 : index
    %57 = vector.load %arg9[%c0_33, %c0_34] : memref<1x32xf32, #tpu.memory_space<vmem>>, vector<1x32xf32>
    %58 = vector.broadcast %57 : vector<1x32xf32> to vector<8x32xf32>
    %59 = arith.addf %56, %58 : vector<8x32xf32>
    %60 = arith.addf %59, %1 : vector<8x32xf32>
    %61 = arith.mulf %60, %60 : vector<8x32xf32>
    %cst_35 = arith.constant dense<0.000000e+00> : vector<8xf32>
    %62 = vector.multi_reduction <add>, %61, %cst_35 [1] : vector<8x32xf32> to vector<8xf32>
    %63 = vector.shape_cast %62 : vector<8xf32> to vector<8x1xf32>
    %cst_36 = arith.constant 3.200000e+01 : f32
    %64 = vector.broadcast %cst_36 : f32 to vector<8x1xf32>
    %65 = arith.divf %63, %64 : vector<8x1xf32>
    %cst_37 = arith.constant 9.99999997E-7 : f32
    %66 = vector.broadcast %cst_37 : f32 to vector<8x1xf32>
    %67 = arith.addf %65, %66 : vector<8x1xf32>
    %68 = math.rsqrt %67 : vector<8x1xf32>
    %69 = vector.broadcast %68 : vector<8x1xf32> to vector<8x32xf32>
    %70 = arith.mulf %60, %69 : vector<8x32xf32>
    %c0_38 = arith.constant 0 : index
    %c0_39 = arith.constant 0 : index
    %71 = vector.load %arg10[%c0_38, %c0_39] : memref<1x32xf32, #tpu.memory_space<vmem>>, vector<1x32xf32>
    %72 = vector.broadcast %71 : vector<1x32xf32> to vector<8x32xf32>
    %73 = arith.mulf %70, %72 : vector<8x32xf32>
    %74 = vector.shape_cast %73 : vector<8x32xf32> to vector<1x8x32xf32>
    %75 = vector.shape_cast %74 : vector<1x8x32xf32> to vector<1x8x32xf32>
    %76 = vector.broadcast %75 : vector<1x8x32xf32> to vector<2x8x32xf32>
    %c0_40 = arith.constant 0 : index
    %c0_41 = arith.constant 0 : index
    %c0_42 = arith.constant 0 : index
    %77 = vector.load %arg11[%c0_40, %c0_41, %c0_42] : memref<2x32x16xf32, #tpu.memory_space<vmem>>, vector<2x32x16xf32>
    "tpu.trace_start"() <{level = 10 : i32, message = "hsd,hde->hse"}> : () -> ()
    %cst_43 = arith.constant dense<0.000000e+00> : vector<2x8x16xf32>
    %78 = tpu.matmul %76, %77, %cst_43 {dimension_numbers = #tpu.dot_dimension_numbers<[2], [1], [1], [2], [0, 0, 0, 1, 1, 2], [0], [0]>} : vector<2x8x32xf32>, vector<2x32x16xf32>, vector<2x8x16xf32> -> vector<2x8x16xf32>
    "tpu.trace_stop"() : () -> ()
    %c0_44 = arith.constant 0 : index
    %c0_45 = arith.constant 0 : index
    %c0_46 = arith.constant 0 : index
    %79 = vector.load %arg12[%c0_44, %c0_45, %c0_46] : memref<4x32x16xf32, #tpu.memory_space<vmem>>, vector<4x32x16xf32>
    "tpu.trace_start"() <{level = 10 : i32, message = "hsd,hde->hse"}> : () -> ()
    %cst_47 = arith.constant dense<0.000000e+00> : vector<4x8x16xf32>
    %80 = tpu.matmul %17, %79, %cst_47 {dimension_numbers = #tpu.dot_dimension_numbers<[2], [1], [1], [2], [0, 0, 0, 1, 1, 2], [0], [0]>} : vector<4x8x32xf32>, vector<4x32x16xf32>, vector<4x8x16xf32> -> vector<4x8x16xf32>
    "tpu.trace_stop"() : () -> ()
    %81 = vector.extract_strided_slice %80 {offsets = [0, 0, 0], sizes = [2, 8, 16], strides = [1, 1, 1]} : vector<4x8x16xf32> to vector<2x8x16xf32>
    %82 = vector.extract_strided_slice %80 {offsets = [2, 0, 0], sizes = [2, 8, 16], strides = [1, 1, 1]} : vector<4x8x16xf32> to vector<2x8x16xf32>
    "tpu.trace_start"() <{level = 10 : i32, message = "hqd,hkd->hqk"}> : () -> ()
    %cst_48 = arith.constant dense<0.000000e+00> : vector<2x8x8xf32>
    %83 = tpu.matmul %78, %81, %cst_48 {dimension_numbers = #tpu.dot_dimension_numbers<[2], [2], [1], [1], [0, 0, 0, 1, 1, 1], [0], [0]>} : vector<2x8x16xf32>, vector<2x8x16xf32>, vector<2x8x8xf32> -> vector<2x8x8xf32>
    "tpu.trace_stop"() : () -> ()
    %cst_49 = arith.constant 2.500000e-01 : f32
    %84 = vector.broadcast %cst_49 : f32 to vector<2x8x8xf32>
    %85 = arith.mulf %83, %84 : vector<2x8x8xf32>
    %cst_50 = arith.constant dense<0xFF800000> : vector<2x8xf32>
    %86 = vector.multi_reduction <maximumf>, %85, %cst_50 [2] : vector<2x8x8xf32> to vector<2x8xf32>
    %87 = vector.shape_cast %86 : vector<2x8xf32> to vector<2x8x1xf32>
    %88 = vector.broadcast %87 : vector<2x8x1xf32> to vector<2x8x8xf32>
    %89 = arith.subf %85, %88 : vector<2x8x8xf32>
    %90 = math.exp %89 : vector<2x8x8xf32>
    %cst_51 = arith.constant dense<0.000000e+00> : vector<2x8xf32>
    %91 = vector.multi_reduction <add>, %90, %cst_51 [2] : vector<2x8x8xf32> to vector<2x8xf32>
    %92 = vector.shape_cast %91 : vector<2x8xf32> to vector<2x8x1xf32>
    %93 = tpu.reciprocal %92 {approx = true} : vector<2x8x1xf32> -> vector<2x8x1xf32>
    %94 = vector.broadcast %93 : vector<2x8x1xf32> to vector<2x8x8xf32>
    %95 = arith.mulf %90, %94 : vector<2x8x8xf32>
    "tpu.trace_start"() <{level = 10 : i32, message = "hqk,hkd->hqd"}> : () -> ()
    %cst_52 = arith.constant dense<0.000000e+00> : vector<2x8x16xf32>
    %96 = tpu.matmul %95, %82, %cst_52 {dimension_numbers = #tpu.dot_dimension_numbers<[2], [1], [1], [2], [0, 0, 0, 1, 1, 2], [0], [0]>} : vector<2x8x8xf32>, vector<2x8x16xf32>, vector<2x8x16xf32> -> vector<2x8x16xf32>
    "tpu.trace_stop"() : () -> ()
    %c0_53 = arith.constant 0 : index
    %c0_54 = arith.constant 0 : index
    %c0_55 = arith.constant 0 : index
    %97 = vector.load %arg13[%c0_53, %c0_54, %c0_55] : memref<2x16x32xf32, #tpu.memory_space<vmem>>, vector<2x16x32xf32>
    "tpu.trace_start"() <{level = 10 : i32, message = "hqd,hdk->hqk"}> : () -> ()
    %cst_56 = arith.constant dense<0.000000e+00> : vector<2x8x32xf32>
    %98 = tpu.matmul %96, %97, %cst_56 {dimension_numbers = #tpu.dot_dimension_numbers<[2], [1], [1], [2], [0, 0, 0, 1, 1, 2], [0], [0]>} : vector<2x8x16xf32>, vector<2x16x32xf32>, vector<2x8x32xf32> -> vector<2x8x32xf32>
    "tpu.trace_stop"() : () -> ()
    %cst_57 = arith.constant dense<0.000000e+00> : vector<8x32xf32>
    %99 = vector.multi_reduction <add>, %98, %cst_57 [0] : vector<2x8x32xf32> to vector<8x32xf32>
    %c0_58 = arith.constant 0 : index
    %c0_59 = arith.constant 0 : index
    %100 = vector.load %arg14[%c0_58, %c0_59] : memref<1x32xf32, #tpu.memory_space<vmem>>, vector<1x32xf32>
    %101 = vector.broadcast %100 : vector<1x32xf32> to vector<8x32xf32>
    %102 = arith.addf %99, %101 : vector<8x32xf32>
    %103 = arith.addf %102, %60 : vector<8x32xf32>
    %c0_60 = arith.constant 0 : index
    %c0_61 = arith.constant 0 : index
    %c0_62 = arith.constant 0 : index
    %104 = vector.load %arg15[%c0_60, %c0_61, %c0_62] : memref<1x8x32xf32, #tpu.memory_space<vmem>>, vector<1x8x32xf32>
    %105 = vector.shape_cast %104 : vector<1x8x32xf32> to vector<8x32xf32>
    %106 = vector.shape_cast %103 : vector<8x32xf32> to vector<1x8x32xf32>
    tpu.vector_store %arg15[%c0_60, %c0_61, %c0_62], %106 {strides = array<i32>} : memref<1x8x32xf32, #tpu.memory_space<vmem>>, vector<1x8x32xf32>,
    return
  }
  func.func @transform_0(%arg0: i32) -> (i32, i32, i32) {
    %c0_i32 = arith.constant 0 : i32
    %c0_i32_0 = arith.constant 0 : i32
    %c0_i32_1 = arith.constant 0 : i32
    return %arg0, %c0_i32, %c0_i32_0 : i32, i32, i32
  }
  func.func @transform_1(%arg0: i32) -> (i32, i32, i32) {
    %c0_i32 = arith.constant 0 : i32
    %c0_i32_0 = arith.constant 0 : i32
    %c0_i32_1 = arith.constant 0 : i32
    return %arg0, %c0_i32, %c0_i32_0 : i32, i32, i32
  }
  func.func @transform_2(%arg0: i32) -> (i32, i32) {
    %c0_i32 = arith.constant 0 : i32
    %c0_i32_0 = arith.constant 0 : i32
    %c0_i32_1 = arith.constant 0 : i32
    return %c0_i32, %c0_i32_0 : i32, i32
  }
  func.func @transform_3(%arg0: i32) -> (i32, i32) {
    %c0_i32 = arith.constant 0 : i32
    %c0_i32_0 = arith.constant 0 : i32
    %c0_i32_1 = arith.constant 0 : i32
    return %c0_i32, %c0_i32_0 : i32, i32
  }
  func.func @transform_4(%arg0: i32) -> (i32, i32) {
    %c0_i32 = arith.constant 0 : i32
    %c0_i32_0 = arith.constant 0 : i32
    %c0_i32_1 = arith.constant 0 : i32
    return %c0_i32, %c0_i32_0 : i32, i32
  }
  func.func @transform_5(%arg0: i32) -> (i32, i32, i32) {
    %c0_i32 = arith.constant 0 : i32
    %c0_i32_0 = arith.constant 0 : i32
    %c0_i32_1 = arith.constant 0 : i32
    %c0_i32_2 = arith.constant 0 : i32
    return %c0_i32, %c0_i32_0, %c0_i32_1 : i32, i32, i32
  }
  func.func @transform_6(%arg0: i32) -> (i32, i32, i32) {
    %c0_i32 = arith.constant 0 : i32
    %c0_i32_0 = arith.constant 0 : i32
    %c0_i32_1 = arith.constant 0 : i32
    %c0_i32_2 = arith.constant 0 : i32
    return %c0_i32, %c0_i32_0, %c0_i32_1 : i32, i32, i32
  }
  func.func @transform_7(%arg0: i32) -> (i32, i32, i32) {
    %c0_i32 = arith.constant 0 : i32
    %c0_i32_0 = arith.constant 0 : i32
    %c0_i32_1 = arith.constant 0 : i32
    %c0_i32_2 = arith.constant 0 : i32
    return %c0_i32, %c0_i32_0, %c0_i32_1 : i32, i32, i32
  }
  func.func @transform_8(%arg0: i32) -> (i32, i32) {
    %c0_i32 = arith.constant 0 : i32
    %c0_i32_0 = arith.constant 0 : i32
    %c0_i32_1 = arith.constant 0 : i32
    return %c0_i32, %c0_i32_0 : i32, i32
  }
  func.func @transform_9(%arg0: i32) -> (i32, i32) {
    %c0_i32 = arith.constant 0 : i32
    %c0_i32_0 = arith.constant 0 : i32
    %c0_i32_1 = arith.constant 0 : i32
    return %c0_i32, %c0_i32_0 : i32, i32
  }
  func.func @transform_10(%arg0: i32) -> (i32, i32, i32) {
    %c0_i32 = arith.constant 0 : i32
    %c0_i32_0 = arith.constant 0 : i32
    %c0_i32_1 = arith.constant 0 : i32
    %c0_i32_2 = arith.constant 0 : i32
    return %c0_i32, %c0_i32_0, %c0_i32_1 : i32, i32, i32
  }
  func.func @transform_11(%arg0: i32) -> (i32, i32, i32) {
    %c0_i32 = arith.constant 0 : i32
    %c0_i32_0 = arith.constant 0 : i32
    %c0_i32_1 = arith.constant 0 : i32
    %c0_i32_2 = arith.constant 0 : i32
    return %c0_i32, %c0_i32_0, %c0_i32_1 : i32, i32, i32
  }
  func.func @transform_12(%arg0: i32) -> (i32, i32, i32) {
    %c0_i32 = arith.constant 0 : i32
    %c0_i32_0 = arith.constant 0 : i32
    %c0_i32_1 = arith.constant 0 : i32
    %c0_i32_2 = arith.constant 0 : i32
    return %c0_i32, %c0_i32_0, %c0_i32_1 : i32, i32, i32
  }
  func.func @transform_13(%arg0: i32) -> (i32, i32) {
    %c0_i32 = arith.constant 0 : i32
    %c0_i32_0 = arith.constant 0 : i32
    %c0_i32_1 = arith.constant 0 : i32
    return %c0_i32, %c0_i32_0 : i32, i32
  }
  func.func @transform_14(%arg0: i32) -> (i32, i32, i32) {
    %c0_i32 = arith.constant 0 : i32
    %c0_i32_0 = arith.constant 0 : i32
    %c0_i32_1 = arith.constant 0 : i32
    return %arg0, %c0_i32, %c0_i32_0 : i32, i32, i32
  }
}

</mosaic_0001>

<bundles_post_ra>
// kernel: tpu_custom_call.1
= control target key start
LH: loop header
LB: loop body
LE: loop exit
PB: predicated region body
PF: predicated region fallthrough
CT: control target
= control target key end

     0   :  { %19 = vsyncpa [#allocation3], 0  ;;  %s3679_s0 = inlined_call_operand.vmem [shape: f32[2,8,32], index: 0, kind: input, shape index: {}]   ;;  %s3680_s1 = inlined_call_operand.vmem [shape: f32[2,8,48], index: 1, kind: input, shape index: {}]   ;;  %s3681_s2 = inlined_call_operand.vmem [shape: f32[48,32], index: 2, kind: input, shape index: {}]   ;;  %s3682_s3 = inlined_call_operand.vmem [shape: f32[1,32], index: 3, kind: input, shape index: {}]   ;;  %s3683_s4 = inlined_call_operand.vmem [shape: f32[1,32], index: 4, kind: input, shape index: {}]   ;;  %s3684_s5 = inlined_call_operand.vmem [shape: f32[2,32,16], index: 5, kind: input, shape index: {}]   ;;  %s3685_s6 = inlined_call_operand.vmem [shape: f32[4,32,16], index: 6, kind: input, shape index: {}]   ;;  %s3686_s7 = inlined_call_operand.vmem [shape: f32[2,16,32], index: 7, kind: input, shape index: {}]   ;;  %s3687_s8 = inlined_call_operand.vmem [shape: f32[1,32], index: 8, kind: input, shape index: {}]   ;;  %s3688_s9 = inlined_call_operand.vmem [shape: f32[1,32], index: 9, kind: input, shape index: {}]   ;;  %s3689_s10 = inlined_call_operand.vmem [shape: f32[2,32,16], index: 10, kind: input, shape index: {}]   ;;  %s3690_s11 = inlined_call_operand.vmem [shape: f32[4,32,16], index: 11, kind: input, shape index: {}]   ;;  %s3691_s12 = inlined_call_operand.vmem [shape: f32[2,16,32], index: 12, kind: input, shape index: {}]   ;;  %s3692_s13 = inlined_call_operand.vmem [shape: f32[1,32], index: 13, kind: input, shape index: {}]   ;;  %s3693_s14 = inlined_call_operand.hbm [shape: f32[2,8,32], index: 14, kind: output, shape index: {}]  }
   0x1   :  { %21 = vsyncpa [#allocation3 + $0x1], 0  ;;  %s3221_s29 = smov 0   ;;  %s3223_s30 = smov 0  }
   0x2   :  { %s3225_s15 = smov 0   ;;  %s3227_s16 = smov 0  }
   0x3 LB: > { %3699 = sst [smem:[#allocation5_spill]] %s3128_s29  ;;  %s3242_s17 = sadd.s32 4294967295, %s3140_s16   ;;  %s3140_s16 = sphi %s3227_s16, %s3708_s16   ;;  %s3136_s15 = sphi %s3225_s15, %s3713_s15   ;;  %s3132_s30 = sphi %s3223_s30, %s3712_s30   ;;  %s3128_s29 = sphi %s3221_s29, %s3711_s29  }
   0x4   : > { %3700 = sst [smem:[#allocation6_spill]] %s3136_s15  ;;  %s2563_s18 = sadd.s32 4294967294, %s3140_s16  }
   0x5   : > { %s3246_s19 = sadd.s32 1, %s3140_s16   ;;  %s338_s20 = sadd.s32 1, %s3136_s15 }
   0x6   : > { %3701 = sst [smem:[#allocation7_spill]] %s3246_s19  ;;  %s335_s21 = ssub.s32 %s3140_s16, %s3246_s19 }
   0x7   : > { %p348_p0 = scmp.ne.s32.totalorder %s3136_s15, %s3132_s30  ;;  %p336_p1 = scmp.eq.s32.totalorder %s335_s21, 0 }
   0x8   : > { %p349_p2 = scmp.eq.s32.totalorder %s3242_s17, 1  ;;  %p354_p3 = scmp.ne.s32.totalorder %s3132_s30, %s3128_s29 }
   0x9   : > { %p355_p4 = scmp.eq.s32.totalorder %s2563_s18, 1  ;;  %p2566_p7 = scmp.ge.s32.totalorder %s3140_s16, 1 }
   0xa   : > { %s3257_s22 = scalar_select %p336_p1, %s3136_s15, %s338_s20  }
   0xb   : > { %p3259_p5 = por %p349_p2, %p348_p0  ;;  %p3263_p6 = por %p355_p4, %p354_p3 }
   0xc   : > { %3702 = sst [smem:[#allocation8_spill]] %s3257_s22  ;;  %p423_p8 = scmp.lt.s32.totalorder %s3140_s16, 3 }
   0xd   : > { %s3704_s24 = scalar_select %p3263_p6, 1, 0 }
   0xe   : > { %p424_p9 = pnand %p2566_p7, %p423_p8 }
   0xf   : > { %3705 = sst [smem:[#allocation9_spill]] %s3704_s24  ;;  %v489_v0 = vld [vmem:[%s3681_s2] sm:$0xff] (!%p424_p9)  ;;  %v490_v1 = vld [vmem:[%s3681_s2 + $0x8] sm:$0xff] (!%p424_p9)  ;;  %v491_v2 = vld [vmem:[%s3681_s2 + $0x10] sm:$0xff] (!%p424_p9)  ;;  %v3142_v3 = vmov (!%p424_p9), 0.0|0.0   ;;  %vm3143_vm0 = vmmov (!%p424_p9), 0  }
  0x10   : > { %427 = sbr.rel (%p424_p9) target bundleno = 2809 (0xaf9), region = 76  ;;  %2919 = vmatprep.subr.bf16.mxu0 (!%p424_p9), %v3142_v3  ;;  %v2920_v4 = vpack.c.bf16 (!%p424_p9), %v490_v1, %v489_v0  ;;  %v492_v5 = vld [vmem:[%s3681_s2 + $0x18] sm:$0xff] (!%p424_p9)  ;;  %v3144_v6 = vmov (!%p424_p9), 0.0   ;;  %p472_p10 = scmp.lt.s32.totalorder (!%p424_p9), %s3242_s17, 1  ;;  %2928 = vmatprep.subr.bf16.mxu1 (!%p424_p9), %v3142_v3  ;;  %v493_v8 = vld [vmem:[%s3681_s2 + $0x20] sm:$0xff] (!%p424_p9)  ;;  %v494_v9 = vld [vmem:[%s3681_s2 + $0x28] sm:$0xff] (!%p424_p9) }
  0x11   : > { %2716 = vmatprep.mubr.msk.f32.mxu0 (!%p424_p9), %vm3143_vm0, %v3144_v6  ;;  %2727 = vmatprep.mubr.msk.f32.mxu1 (!%p424_p9), %vm3143_vm0, %v3144_v6  ;;  %v2923_v7 = vpack.c.bf16 (!%p424_p9), %v492_v5, %v491_v2  ;;  %v2926_v10 = vpack.c.bf16 (!%p424_p9), %v494_v9, %v493_v8  ;;  %vm577_vm1 = vcmask (!%p424_p9), 261120   ;;  %v594_v18 = vld [vmem:[%s3684_s5] sm:$0xff] (!%p424_p9)  ;;  %v595_v19 = vld [vmem:[%s3684_s5 + $0x8] sm:$0xff] (!%p424_p9)  ;;  %v596_v20 = vld [vmem:[%s3684_s5 + $0x10] sm:$0xff] (!%p424_p9)  ;;  %vm502_vm2 = vcmask (!%p424_p9), 392192  }
  0x12   : > { %2921 = vmatpush3.bf16.msra.mxu0 (!%p424_p9), %v2920_v4  ;;  %v2929_v21 = vpack.c.bf16 (!%p424_p9), %v595_v19, %v594_v18  ;;  %v597_v22 = vld [vmem:[%s3684_s5 + $0x18] sm:$0xff] (!%p424_p9)  ;;  %v745_v26 = vld [vmem:[%s3685_s6] sm:$0xff] (!%p424_p9)  ;;  %v746_v27 = vld [vmem:[%s3685_s6 + $0x8] sm:$0xff] (!%p424_p9)  ;;  %vm1044_vm3 = vcmask (!%p424_p9), 130048   ;;  %vm1199_vm4 = vcmask (!%p424_p9), 64512  }
  0x13   : > { %2922 = vmatprep.subr.bf16.mxu0 (!%p424_p9), %v3142_v3  ;;  %v2932_v23 = vpack.c.bf16 (!%p424_p9), %v597_v22, %v596_v20  ;;  %v2941_v28 = vpack.c.bf16 (!%p424_p9), %v746_v27, %v745_v26  ;;  %v747_v29 = vld [vmem:[%s3685_s6 + $0x10] sm:$0xff] (!%p424_p9)  ;;  %v748_v30 = vld [vmem:[%s3685_s6 + $0x18] sm:$0xff] (!%p424_p9)  ;;  %v598_v35 = vld [vmem:[%s3684_s5 + $0x20] sm:$0xff] (!%p424_p9) }
  0x14   : > { %2930 = vmatpush3.bf16.msra.mxu1 (!%p424_p9), %v2929_v21  ;;  %v2944_v31 = vpack.c.bf16 (!%p424_p9), %v748_v30, %v747_v29  ;;  %v599_v36 = vld [vmem:[%s3684_s5 + $0x28] sm:$0xff] (!%p424_p9)  ;;  %v2573_v38 = vld [vmem:[%s3683_s4] ss:$0 sm:$0xff] (!%p424_p9)  ;;  %v600_v42 = vld [vmem:[%s3684_s5 + $0x30] sm:$0xff] (!%p424_p9) }
  0x15   : > { %2931 = vmatprep.subr.bf16.mxu1 (!%p424_p9), %v3142_v3  ;;  %v2935_v40 = vpack.c.bf16 (!%p424_p9), %v599_v36, %v598_v35  ;;  %v601_v43 = vld [vmem:[%s3684_s5 + $0x38] sm:$0xff] (!%p424_p9)  ;;  %v749_v45 = vld [vmem:[%s3685_s6 + $0x20] sm:$0xff] (!%p424_p9)  ;;  %v750_v46 = vld [vmem:[%s3685_s6 + $0x28] sm:$0xff] (!%p424_p9) }
  0x16   : > { %2924 = vmatpush3.bf16.msra.mxu0 (!%p424_p9), %v2923_v7  ;;  %v2938_v44 = vpack.c.bf16 (!%p424_p9), %v601_v43, %v600_v42  ;;  %v2947_v47 = vpack.c.bf16 (!%p424_p9), %v750_v46, %v749_v45  ;;  %v751_v48 = vld [vmem:[%s3685_s6 + $0x30] sm:$0xff] (!%p424_p9)  ;;  %v752_v49 = vld [vmem:[%s3685_s6 + $0x38] sm:$0xff] (!%p424_p9)  ;;  %v753_v51 = vld [vmem:[%s3685_s6 + $0x40] sm:$0xff] (!%p424_p9) }
  0x17   : > { %s473_s25 = scalar_select %p472_p10, %s3242_s17, 1  ;;  %2925 = vmatprep.subr.bf16.mxu0 %v3142_v3  ;;  %v2950_v50 = vpack.c.bf16 %v752_v49, %v751_v48  ;;  %v754_v52 = vld [vmem:[%s3685_s6 + $0x48] sm:$0xff]  ;;  %v757_v53 = vld [vmem:[%s3685_s6 + $0x60] sm:$0xff]  ;;  %v755_v59 = vld [vmem:[%s3685_s6 + $0x50] sm:$0xff] }
  0x18   : > { %2933 = vmatpush3.bf16.msra.mxu1 %v2932_v23  ;;  %v758_v54 = vld [vmem:[%s3685_s6 + $0x68] sm:$0xff]  ;;  %v2571_v55 = vld [vmem:[%s3682_s3] ss:$0 sm:$0xff]  ;;  %v2953_v57 = vpack.c.bf16 %v754_v52, %v753_v51  ;;  %v756_v62 = vld [vmem:[%s3685_s6 + $0x58] sm:$0xff] }
  0x19   : > { %s2568_s18 = sshll.u32 %s473_s25, 3  ;;  %2934 = vmatprep.subr.bf16.mxu1 %v3142_v3  ;;  %v2959_v58 = vpack.c.bf16 %v758_v54, %v757_v53  ;;  %v759_v63 = vld [vmem:[%s3685_s6 + $0x70] sm:$0xff]  ;;  %v760_v0 = vld [vmem:[%s3685_s6 + $0x78] sm:$0xff]  ;;  %v2956_v1 = vpack.c.bf16 %v756_v62, %v755_v59  ;;  %s2606_s25 = sshll.u32 %s3242_s17, 7 }
  0x1a   : > { %s479_s15 = scalar_lea.vmem %s3680_s1, %s2568_s18  ;;  %s475_s29 = scalar_lea.vmem %s3679_s0, %s2568_s18  ;;  %2927 = vmatpush3.bf16.msra.mxu0 %v2926_v10  ;;  %v2962_v2 = vpack.c.bf16 %v760_v0, %v759_v63  ;;  %v1370_v45 = vld [vmem:[%s3686_s7 + $0x10] sm:$0xff]  ;;  %v1371_v46 = vld [vmem:[%s3686_s7 + $0x18] sm:$0xff] }
  0x1b   : > { %v481_v11 = vld [vmem:[%s479_s15] sm:$0xff]  ;;  %2940 = vmatprep.subr.bf16.mxu0 %v3142_v3  ;;  %s469_s15 = sand.u32 1, %s3132_s30   ;;  %s3636_s18 = scalar_lea.hbm %s3693_s14, %s2606_s25 }
  0x1c   : > { %v3302_v12 = vld [vmem:[%s475_s29] sm:$0xff]  ;;  %v2570_v13 = vmul.f32 -1.442695, %v481_v11  ;;  %s2567_s29 = sshll.u32 %s469_s15, 3  ;;  %s2479_s20 = scalar_lea.sflag [#allocation3], %s469_s15 }
  0x1d   : > { %v576_v14 = vmul.f32 %v3302_v12, %v3302_v12  ;;  %s471_s26 = scalar_lea.vmem [#allocation2], %s2567_s29  ;;  %s3145_s17 = smov [#allocation2]  }
  0x1e   : > { %3054 = vpow2.f32 %v2570_v13  ;;  %s2492_s27 = sshll.u32 %s471_s26, 4  ;;  %s3082_s29 = sshll.u32 %s3145_s17, 4  ;;  %s3638_s27 = int_to_ptr.vmem [resolvable:$true] %s2492_s27  ;;  %s3083_s29 = int_to_ptr.vmem [resolvable:$false] %s3082_s29 }
  0x1f   : > { %v578_v15 = vsel %vm577_vm1, %v576_v14, 0.0  ;;  %s3078_s21 = scalar_lea.vmem %s3638_s27, 128  ;;  %s3084_s19 = scalar_lea.vmem %s3083_s29, 256 }
  0x20   : > { %579 = vadd.xlane.f32.xlu0 %v578_v15  ;;  %p3079_p11 = scmp.ne.s32.totalorder %s3638_s27, %s3078_s21  ;;  %p3085_p0 = scmp.lt.s32.totalorder %s3638_s27, %s3083_s29 }
  0x21   : > { %p3086_p1 = scmp.lt.s32.totalorder %s3084_s19, %s3078_s21 }
  0x22   : > { %p3080_p12 = pnand %p3079_p11, %p3259_p5 }
  0x23   : > { %p3087_p2 = por %p3086_p1, %p3085_p0 }
  0x24   : > { %p3081_p13 = pneg %p3080_p12 }
  0x26   : > { %p3088_p3 = pnand %p3087_p2, %p3081_p13 }
  0x28   : > { %v3055_v16 = vpop.eup %3054 }
  0x29   : > { %v485_v17 = vadd.f32 1.0, %v3055_v16 }
  0x2b   : > { %3056 = vrcp.f32 %v485_v17 }
  0x35   : > { %v3057_v24 = vpop.eup %3056 }
  0x36   : > { %v488_v25 = vmul.f32 %v3057_v24, %v481_v11 }
  0x38   : > { %2717 = vmatmul.mubr.msk.f32.vlgmr.msra.gmra.mrb[0].mxu0 %vm502_vm2, %v488_v25 }
  0x39   : > { %2749 = vmatprep.mubr.msk.f32.mxu0 %vm3143_vm0, %v3144_v6  ;;  %2942 = vmatpush3.bf16.msra.mxu0 %v2941_v28 }
  0x3a   : > { %2943 = vmatprep.subr.bf16.mxu0 %v3142_v3 }
  0x3d   : > { %2945 = vmatpush3.bf16.msra.mxu0 %v2944_v31 }
  0x3e   : > { %2952 = vmatprep.subr.bf16.mxu0 %v3142_v3 }
  0xad   : > { %v580_v32 = vpop.xlane.xlu0 %579 }
  0xae   : > { %v582_v33 = vmul.f32 0.03125, %v580_v32 }
  0xb0   : > { %v583_v34 = vadd.f32 1e-06, %v582_v33 }
  0xb2   : > { %3058 = vrsqrt.f32 %v583_v34 }
  0xbc   : > { %v3059_v37 = vpop.eup %3058 }
  0xbd   : > { %v585_v39 = vmul.f32 %v3059_v37, %v3302_v12 }
  0xbf   : > { %v593_v41 = vmul.f32 %v2573_v38, %v585_v39  ;;  %v1368_v38 = vld [vmem:[%s3686_s7] sm:$0xff]  ;;  %v1369_v39 = vld [vmem:[%s3686_s7 + $0x8] sm:$0xff] }
  0xc1   : > { %2728 = vmatmul.mubr.msk.f32.vlgmr.msra.gmra.mrb[0].mxu1 %vm577_vm1, %v593_v41 }
  0xc2   : > { %2936 = vmatpush3.bf16.msra.mxu1 %v2935_v40  ;;  %2738 = vmatprep.mubr.msk.f32.mxu1 %vm3143_vm0, %v3144_v6 }
  0xc3   : > { %2937 = vmatprep.subr.bf16.mxu1 %v3142_v3 }
  0xc6   : > { %2939 = vmatpush3.bf16.msra.mxu1 %v2938_v44 }
  0xc7   : > { %2946 = vmatprep.subr.bf16.mxu1 %v3142_v3 }
  0xc9   : > { %2739 = vmatmul.mubr.msk.f32.vlgmr.msra.gmra.mrb[2].mxu1 %vm577_vm1, %v593_v41  ;;  %v2965_v41 = vpack.c.bf16 %v1369_v39, %v1368_v38 }
  0xca   : > { %2948 = vmatpush3.bf16.msra.mxu1 %v2947_v47  ;;  %2760 = vmatprep.mubr.msk.f32.mxu1 %vm3143_vm0, %v3144_v6  ;;  %v2968_v47 = vpack.c.bf16 %v1371_v46, %v1370_v45 }
  0xcb   : > { %2949 = vmatprep.subr.bf16.mxu1 %v3142_v3 }
  0xce   : > { %2951 = vmatpush3.bf16.msra.mxu1 %v2950_v50 }
  0xcf   : > { %2958 = vmatprep.subr.bf16.mxu1 %v3142_v3 }
 0x10b   : > { %v572_v56 = vpop.f32.mrb[0].mxu0 }
 0x10c   : > { %v3395_v60 = vadd.f32 %v2571_v55, %v572_v56  ;;  %v2718_v61 = vpop.f32.mrb[1].mxu0 }
 0x10e   : > { %2750 = vmatmul.mubr.msk.f32.vlgmr.msra.gmra.mrb[2].mxu0 %vm577_vm1, %v3395_v60  ;;  %2761 = vmatmul.mubr.msk.f32.vlgmr.msra.gmra.mrb[4].mxu1 %vm577_vm1, %v3395_v60 }
 0x10f   : > { %2954 = vmatpush3.bf16.msra.mxu0 %v2953_v57  ;;  %2960 = vmatpush3.bf16.msra.mxu1 %v2959_v58  ;;  %v2588_v57 = vld [vmem:[%s3687_s8] ss:$0 sm:$0xff] }
 0x110   : > { %2955 = vmatprep.subr.bf16.mxu0 %v3142_v3  ;;  %2961 = vmatprep.subr.bf16.mxu1 %v3142_v3 }
 0x111   : > { %2771 = vmatprep.mubr.msk.f32.mxu0 %vm3143_vm0, %v3144_v6  ;;  %2782 = vmatprep.mubr.msk.f32.mxu1 %vm3143_vm0, %v3144_v6 }
 0x113   : > { %2957 = vmatpush3.bf16.msra.mxu0 %v2956_v1  ;;  %2963 = vmatpush3.bf16.msra.mxu1 %v2962_v2  ;;  %v1546_v1 = vld [vmem:[%s3689_s10] sm:$0xff]  ;;  %v1547_v2 = vld [vmem:[%s3689_s10 + $0x8] sm:$0xff] }
 0x114   : > { %2785 = vmatprep.subr.mxu0 %v3144_v6  ;;  %2795 = vmatprep.subr.mxu1 %v3144_v6 }
 0x116   : > { %2772 = vmatmul.mubr.msk.f32.vlgmr.msra.gmra.mrb[4].mxu0 %vm577_vm1, %v3395_v60  ;;  %2783 = vmatmul.mubr.msk.f32.vlgmr.msra.gmra.mrb[6].mxu1 %vm577_vm1, %v3395_v60 }
 0x117   : > { %2787 = vmatprep.mubr.msk.f32.mxu0 %vm3143_vm0, %v3144_v6  ;;  %2797 = vmatprep.mubr.msk.f32.mxu1 %vm3143_vm0, %v3144_v6 }
 0x194   : > { %v671_v4 = vpop.f32.mrb[0].mxu1 }
 0x195   : > { %v2729_v5 = vpop.f32.mrb[1].mxu1 }
 0x196   : > { %v1551_v5 = vld [vmem:[%s3689_s10 + $0x28] sm:$0xff] }
 0x19c   : > { %v741_v7 = vpop.f32.mrb[2].mxu1 }
 0x19d   : > { %v2740_v8 = vpop.f32.mrb[3].mxu1 }
 0x19e   : > { %v1548_v8 = vld [vmem:[%s3689_s10 + $0x10] sm:$0xff] }
 0x1e1   : > { %v830_v9 = vpop.f32.mrb[2].mxu0  ;;  %v900_v10 = vpop.f32.mrb[4].mxu1 }
 0x1e2   : > { %v2751_v11 = vpop.f32.mrb[3].mxu0  ;;  %v2762_v13 = vpop.f32.mrb[5].mxu1  ;;  %2786 = vmatpush3.xpose.msk.msra.mxu0 %vm1044_vm3, %v830_v9  ;;  %v1549_v9 = vld [vmem:[%s3689_s10 + $0x18] sm:$0xff] }
 0x1e3   : > { %2790 = vmatprep.subr.mxu0 %v3144_v6  ;;  %v2974_v11 = vpack.c.bf16 %v1549_v9, %v1548_v8  ;;  %v1553_v13 = vld [vmem:[%s3689_s10 + $0x38] sm:$0xff] }
 0x1e5   : > { %2788 = vmatmul.mubr.msk.f32.vlgmr.msra.gmra.mrb[6].mxu0 %vm1044_vm3, %v671_v4  ;;  %v1550_v4 = vld [vmem:[%s3689_s10 + $0x20] sm:$0xff] }
 0x1e6   : > { %2791 = vmatpush3.xpose.msk.msra.mxu0 %vm1044_vm3, %v900_v10  ;;  %2792 = vmatprep.mubr.msk.f32.mxu0 %vm3143_vm0, %v3144_v6  ;;  %v1552_v10 = vld [vmem:[%s3689_s10 + $0x30] sm:$0xff] }
 0x1e7   : > { %2800 = vmatprep.subr.mxu0 %v3144_v6 }
 0x1e9   : > { %v970_v14 = vpop.f32.mrb[4].mxu0  ;;  %v1040_v15 = vpop.f32.mrb[6].mxu1  ;;  %2793 = vmatmul.mubr.msk.f32.vlgmr.msra.gmra.mrb[8].mxu0 %vm1044_vm3, %v741_v7  ;;  %v2977_v7 = vpack.c.bf16 %v1551_v5, %v1550_v4 }
 0x1ea   : > { %v2773_v16 = vpop.f32.mrb[5].mxu0  ;;  %v2784_v17 = vpop.f32.mrb[7].mxu1  ;;  %2796 = vmatpush3.msra.mxu1 %v970_v14  ;;  %2801 = vmatpush3.msra.mxu0 %v1040_v15  ;;  %v2980_v14 = vpack.c.bf16 %v1553_v13, %v1552_v10 }
 0x1eb   : > { %2802 = vmatprep.mubr.msk.f32.mxu0 %vm3143_vm0, %v3144_v6  ;;  %2964 = vmatprep.subr.bf16.mxu1 %v3142_v3 }
 0x1ec   : > { %2967 = vmatprep.subr.bf16.mxu0 %v3142_v3 }
 0x2b8   : > { %v1117_v18 = vpop.f32.mrb[6].mxu0 }
 0x2b9   : > { %v1197_v19 = vmul.f32 0.25, %v1117_v18  ;;  %v2789_v20 = vpop.f32.mrb[7].mxu0  ;;  %v1697_v18 = vld [vmem:[%s3690_s11] sm:$0xff] }
 0x2ba   : > { %v1701_v20 = vld [vmem:[%s3690_s11 + $0x20] sm:$0xff] }
 0x2bb   : > { %v1200_v21 = vsel %vm1199_vm4, %v1197_v19, -inf }
 0x2bc   : > { %1201 = vmax.xlane.f32.xlu0 %v1200_v21  ;;  %v1193_v22 = vpop.f32.mrb[8].mxu0  ;;  %v1702_v21 = vld [vmem:[%s3690_s11 + $0x28] sm:$0xff] }
 0x2bd   : > { %v1198_v23 = vmul.f32 0.25, %v1193_v22  ;;  %v2794_v24 = vpop.f32.mrb[9].mxu0 }
 0x2bf   : > { %v1203_v25 = vsel %vm1199_vm4, %v1198_v23, -inf }
 0x2c0   : > { %1204 = vmax.xlane.f32.xlu1 %v1203_v25 }
 0x349   : > { %v1202_v26 = vpop.xlane.xlu0 %1201 }
 0x34a   : > { %v1206_v27 = vsub.f32 %v1197_v19, %v1202_v26  ;;  %v1698_v19 = vld [vmem:[%s3690_s11 + $0x8] sm:$0xff]  ;;  %v2989_v26 = vpack.c.bf16 %v1702_v21, %v1701_v20 }
 0x34b   : > { %v2983_v25 = vpack.c.bf16 %v1698_v19, %v1697_v18  ;;  %v2315_v18 = vld [vmem:[%s3691_s12] sm:$0xff]  ;;  %v2316_v19 = vld [vmem:[%s3691_s12 + $0x8] sm:$0xff] }
 0x34c   : > { %v1208_v28 = vmul.f32 1.442695, %v1206_v27  ;;  %v1699_v27 = vld [vmem:[%s3690_s11 + $0x10] sm:$0xff] }
 0x34d   : > { %v1205_v29 = vpop.xlane.xlu1 %1204 }
 0x34e   : > { %3060 = vpow2.f32 %v1208_v28  ;;  %v1207_v30 = vsub.f32 %v1198_v23, %v1205_v29  ;;  %v2589_v23 = vld [vmem:[%s3688_s9] ss:$0 sm:$0xff]  ;;  %v1700_v29 = vld [vmem:[%s3690_s11 + $0x18] sm:$0xff] }
 0x350   : > { %v1210_v31 = vmul.f32 1.442695, %v1207_v30  ;;  %v1703_v30 = vld [vmem:[%s3690_s11 + $0x30] sm:$0xff] }
 0x352   : > { %3062 = vpow2.f32 %v1210_v31  ;;  %v1704_v31 = vld [vmem:[%s3690_s11 + $0x38] sm:$0xff] }
 0x358   : > { %v3061_v32 = vpop.eup %3060 }
 0x359   : > { %v1212_v33 = vsel %vm1199_vm4, %v3061_v32, 0.0 }
 0x35a   : > { %1213 = vadd.xlane.f32.xlu1 %v1212_v33  ;;  %v2992_v33 = vpack.c.bf16 %v1704_v31, %v1703_v30 }
 0x35c   : > { %v3063_v34 = vpop.eup %3062 }
 0x35d   : > { %v1215_v35 = vsel %vm1199_vm4, %v3063_v34, 0.0 }
 0x35e   : > { %1216 = vadd.xlane.f32.xlu0 %v1215_v35  ;;  %v1706_v35 = vld [vmem:[%s3690_s11 + $0x48] sm:$0xff] }
 0x3e7   : > { %v1214_v36 = vpop.xlane.xlu1 %1213 }
 0x3e8   : > { %3064 = vrcp.f32 %v1214_v36  ;;  %v1709_v36 = vld [vmem:[%s3690_s11 + $0x60] sm:$0xff] }
 0x3eb   : > { %v1217_v37 = vpop.xlane.xlu0 %1216 }
 0x3ec   : > { %3066 = vrcp.f32 %v1217_v37  ;;  %v1710_v37 = vld [vmem:[%s3690_s11 + $0x68] sm:$0xff] }
 0x3ed   : > { %v3001_v39 = vpack.c.bf16 %v1710_v37, %v1709_v36 }
 0x3f2   : > { %v3065_v40 = vpop.eup %3064 }
 0x3f3   : > { %v1220_v42 = vmul.f32 %v3065_v40, %v3061_v32  ;;  %v2986_v32 = vpack.c.bf16 %v1700_v29, %v1699_v27  ;;  %v1707_v40 = vld [vmem:[%s3690_s11 + $0x50] sm:$0xff] }
 0x3f5   : > { %2798 = vmatmul.mubr.msk.f32.vlgmr.msra.gmra.mrb[8].mxu1 %vm1199_vm4, %v1220_v42  ;;  %v1711_v42 = vld [vmem:[%s3690_s11 + $0x70] sm:$0xff] }
 0x3f6   : > { %v3067_v43 = vpop.eup %3066  ;;  %2966 = vmatpush3.bf16.msra.mxu1 %v2965_v41  ;;  %2809 = vmatprep.mubr.msk.f32.mxu1 %vm3143_vm0, %v3144_v6  ;;  %v1708_v41 = vld [vmem:[%s3690_s11 + $0x58] sm:$0xff] }
 0x3f7   : > { %v1221_v44 = vmul.f32 %v3067_v43, %v3063_v34  ;;  %2970 = vmatprep.subr.bf16.mxu1 %v3142_v3  ;;  %v1705_v34 = vld [vmem:[%s3690_s11 + $0x40] sm:$0xff]  ;;  %v1712_v43 = vld [vmem:[%s3690_s11 + $0x78] sm:$0xff] }
 0x3f8   : > { %v2995_v38 = vpack.c.bf16 %v1706_v35, %v1705_v34  ;;  %v3004_v45 = vpack.c.bf16 %v1712_v43, %v1711_v42 }
 0x3f9   : > { %2803 = vmatmul.mubr.msk.f32.vlgmr.msra.gmra.mrb[10].mxu0 %vm1199_vm4, %v1221_v44  ;;  %v2998_v44 = vpack.c.bf16 %v1708_v41, %v1707_v40 }
 0x3fa   : > { %2816 = vmatprep.mubr.msk.f32.mxu0 %vm3143_vm0, %v3144_v6  ;;  %2969 = vmatpush3.bf16.msra.mxu0 %v2968_v47 }
 0x3fb   : > { %2976 = vmatprep.subr.bf16.mxu0 %v3142_v3 }
 0x4c8   : > { %v1291_v48 = vpop.f32.mrb[8].mxu1 }
 0x4c9   : > { %v2799_v49 = vpop.f32.mrb[9].mxu1  ;;  %2810 = vmatmul.mubr.msk.f32.vlgmr.msra.gmra.mrb[10].mxu1 %vm1044_vm3, %v1291_v48 }
 0x4ca   : > { %2827 = vmatprep.mubr.msk.f32.mxu1 %vm3143_vm0, %v3144_v6 }
 0x4cc   : > { %v1364_v50 = vpop.f32.mrb[10].mxu0 }
 0x4cd   : > { %v2804_v51 = vpop.f32.mrb[11].mxu0  ;;  %2817 = vmatmul.mubr.msk.f32.vlgmr.msra.gmra.mrb[12].mxu0 %vm1044_vm3, %v1364_v50 }
 0x4ce   : > { %2838 = vmatprep.mubr.msk.f32.mxu0 %vm3143_vm0, %v3144_v6  ;;  %2978 = vmatpush3.bf16.msra.mxu0 %v2977_v7 }
 0x4cf   : > { %2979 = vmatprep.subr.bf16.mxu0 %v3142_v3 }
 0x4d2   : > { %2981 = vmatpush3.bf16.msra.mxu0 %v2980_v14 }
 0x4d3   : > { %2988 = vmatprep.subr.bf16.mxu0 %v3142_v3 }
 0x59c   : > { %v1441_v52 = vpop.f32.mrb[10].mxu1 }
 0x59d   : > { %v2811_v53 = vpop.f32.mrb[11].mxu1  ;;  %v1518_v55 = vsel %vm577_vm1, %v1441_v52, 0.0 }
 0x5a0   : > { %v1514_v54 = vpop.f32.mrb[12].mxu0 }
 0x5a1   : > { %v1519_v56 = vsel %vm577_vm1, %v1514_v54, 0.0  ;;  %v2818_v58 = vpop.f32.mrb[13].mxu0 }
 0x5a2   : > { %v1520_v59 = vadd.f32 %v1519_v56, %v1518_v55 }
 0x5a4   : > { %v1528_v61 = vadd.f32 %v2588_v57, %v1520_v59 }
 0x5a6   : > { %v3474_v62 = vadd.f32 %v1528_v61, %v3302_v12  ;;  %v2971_v12 = vpack.c.bf16 %v1547_v2, %v1546_v1 }
 0x5a8   : > { %v1530_v63 = vmul.f32 %v3474_v62, %v3474_v62  ;;  %2972 = vmatpush3.bf16.msra.mxu1 %v2971_v12 }
 0x5a9   : > { %2973 = vmatprep.subr.bf16.mxu1 %v3142_v3 }
 0x5aa   : > { %v1531_v0 = vsel %vm577_vm1, %v1530_v63, 0.0 }
 0x5ab   : > { %1532 = vadd.xlane.f32.xlu1 %v1531_v0 }
 0x5ac   : > { %2975 = vmatpush3.bf16.msra.mxu1 %v2974_v11 }
 0x5ad   : > { %2982 = vmatprep.subr.bf16.mxu1 %v3142_v3 }
 0x638   : > { %v1533_v15 = vpop.xlane.xlu1 %1532 }
 0x639   : > { %v1534_v16 = vmul.f32 0.03125, %v1533_v15 }
 0x63b   : > { %v1535_v17 = vadd.f32 1e-06, %v1534_v16  ;;  %v2317_v16 = vld [vmem:[%s3691_s12 + $0x10] sm:$0xff] }
 0x63d   : > { %3068 = vrsqrt.f32 %v1535_v17  ;;  %v2318_v17 = vld [vmem:[%s3691_s12 + $0x18] sm:$0xff] }
 0x63e   : > { %v3010_v21 = vpack.c.bf16 %v2318_v17, %v2317_v16 }
 0x647   : > { %v3069_v22 = vpop.eup %3068 }
 0x648   : > { %v1537_v24 = vmul.f32 %v3069_v22, %v3474_v62 }
 0x64a   : > { %v1545_v28 = vmul.f32 %v2589_v23, %v1537_v24  ;;  %v3007_v24 = vpack.c.bf16 %v2316_v19, %v2315_v18 }
 0x64c   : > { %2828 = vmatmul.mubr.msk.f32.vlgmr.msra.gmra.mrb[12].mxu1 %vm577_vm1, %v1545_v28  ;;  %2839 = vmatmul.mubr.msk.f32.vlgmr.msra.gmra.mrb[14].mxu0 %vm577_vm1, %v1545_v28 }
 0x64d   : > { %2984 = vmatpush3.bf16.msra.mxu1 %v2983_v25  ;;  %2990 = vmatpush3.bf16.msra.mxu0 %v2989_v26 }
 0x64e   : > { %2985 = vmatprep.subr.bf16.mxu1 %v3142_v3  ;;  %2991 = vmatprep.subr.bf16.mxu0 %v3142_v3 }
 0x64f   : > { %2849 = vmatprep.mubr.msk.f32.mxu1 %vm3143_vm0, %v3144_v6  ;;  %2860 = vmatprep.mubr.msk.f32.mxu0 %vm3143_vm0, %v3144_v6 }
 0x651   : > { %2987 = vmatpush3.bf16.msra.mxu1 %v2986_v32  ;;  %2993 = vmatpush3.bf16.msra.mxu0 %v2992_v33 }
 0x652   : > { %2994 = vmatprep.subr.bf16.mxu1 %v3142_v3  ;;  %3000 = vmatprep.subr.bf16.mxu0 %v3142_v3 }
 0x654   : > { %2850 = vmatmul.mubr.msk.f32.vlgmr.msra.gmra.mrb[14].mxu1 %vm577_vm1, %v3395_v60  ;;  %2861 = vmatmul.mubr.msk.f32.vlgmr.msra.gmra.mrb[16].mxu0 %vm577_vm1, %v3395_v60 }
 0x655   : > { %2996 = vmatpush3.bf16.msra.mxu1 %v2995_v38  ;;  %3002 = vmatpush3.bf16.msra.mxu0 %v3001_v39 }
 0x656   : > { %2997 = vmatprep.subr.bf16.mxu1 %v3142_v3  ;;  %3003 = vmatprep.subr.bf16.mxu0 %v3142_v3 }
 0x657   : > { %2871 = vmatprep.mubr.msk.f32.mxu1 %vm3143_vm0, %v3144_v6  ;;  %2882 = vmatprep.mubr.msk.f32.mxu0 %vm3143_vm0, %v3144_v6 }
 0x659   : > { %2999 = vmatpush3.bf16.msra.mxu1 %v2998_v44  ;;  %3005 = vmatpush3.bf16.msra.mxu0 %v3004_v45 }
 0x65a   : > { %2885 = vmatprep.subr.mxu1 %v3144_v6  ;;  %2890 = vmatprep.subr.mxu0 %v3144_v6 }
 0x65c   : > { %2872 = vmatmul.mubr.msk.f32.vlgmr.msra.gmra.mrb[16].mxu1 %vm577_vm1, %v3395_v60  ;;  %2883 = vmatmul.mubr.msk.f32.vlgmr.msra.gmra.mrb[18].mxu0 %vm577_vm1, %v3395_v60 }
 0x65d   : > { %2887 = vmatprep.mubr.msk.f32.mxu1 %vm3143_vm0, %v3144_v6  ;;  %2892 = vmatprep.mubr.msk.f32.mxu0 %vm3143_vm0, %v3144_v6 }
 0x71f   : > { %v1623_v46 = vpop.f32.mrb[12].mxu1  ;;  %v1693_v47 = vpop.f32.mrb[14].mxu0 }
 0x720   : > { %v2829_v48 = vpop.f32.mrb[13].mxu1  ;;  %v2840_v49 = vpop.f32.mrb[15].mxu0 }
 0x727   : > { %v1779_v50 = vpop.f32.mrb[14].mxu1  ;;  %v1849_v51 = vpop.f32.mrb[16].mxu0 }
 0x728   : > { %v2851_v52 = vpop.f32.mrb[15].mxu1  ;;  %v2862_v53 = vpop.f32.mrb[17].mxu0  ;;  %2886 = vmatpush3.xpose.msk.msra.mxu1 %vm1044_vm3, %v1779_v50  ;;  %2891 = vmatpush3.xpose.msk.msra.mxu0 %vm1044_vm3, %v1849_v51 }
 0x729   : > { %2895 = vmatprep.subr.mxu1 %v3144_v6  ;;  %2900 = vmatprep.subr.mxu0 %v3144_v6 }
 0x72b   : > { %2888 = vmatmul.mubr.msk.f32.vlgmr.msra.gmra.mrb[18].mxu1 %vm1044_vm3, %v1623_v46  ;;  %2893 = vmatmul.mubr.msk.f32.vlgmr.msra.gmra.mrb[20].mxu0 %vm1044_vm3, %v1693_v47 }
 0x72c   : > { %2897 = vmatprep.mubr.msk.f32.mxu1 %vm3143_vm0, %v3144_v6  ;;  %2902 = vmatprep.mubr.msk.f32.mxu0 %vm3143_vm0, %v3144_v6 }
 0x72f   : > { %v1919_v60 = vpop.f32.mrb[16].mxu1  ;;  %v1989_v54 = vpop.f32.mrb[18].mxu0 }
 0x730   : > { %v2873_v55 = vpop.f32.mrb[17].mxu1  ;;  %v2884_v56 = vpop.f32.mrb[19].mxu0  ;;  %2896 = vmatpush3.msra.mxu1 %v1919_v60  ;;  %2901 = vmatpush3.msra.mxu0 %v1989_v54 }
 0x731   : > { %3006 = vmatprep.subr.bf16.mxu1 %v3142_v3  ;;  %3009 = vmatprep.subr.bf16.mxu0 %v3142_v3 }
 0x7fe   : > { %v2065_v57 = vpop.f32.mrb[18].mxu1  ;;  %v2141_v58 = vpop.f32.mrb[20].mxu0 }
 0x7ff   : > { %v2145_v59 = vmul.f32 0.25, %v2065_v57  ;;  %v2146_v61 = vmul.f32 0.25, %v2141_v58  ;;  %v2889_v63 = vpop.f32.mrb[19].mxu1  ;;  %v2894_v0 = vpop.f32.mrb[21].mxu0 }
 0x801   : > { %v2150_v1 = vsel %vm1199_vm4, %v2146_v61, -inf  ;;  %v2147_v2 = vsel %vm1199_vm4, %v2145_v59, -inf }
 0x802   : > { %2151 = vmax.xlane.f32.xlu1 %v2150_v1  ;;  %2148 = vmax.xlane.f32.xlu0 %v2147_v2 }
 0x88f   : > { %v2152_v4 = vpop.xlane.xlu1 %2151  ;;  %v2149_v12 = vpop.xlane.xlu0 %2148 }
 0x890   : > { %v2154_v5 = vsub.f32 %v2146_v61, %v2152_v4  ;;  %v2153_v7 = vsub.f32 %v2145_v59, %v2149_v12 }
 0x892   : > { %v2157_v8 = vmul.f32 1.442695, %v2154_v5  ;;  %v2155_v9 = vmul.f32 1.442695, %v2153_v7 }
 0x894   : > { %3070 = vpow2.f32 %v2157_v8 }
 0x895   : > { %3072 = vpow2.f32 %v2155_v9 }
 0x89e   : > { %v3071_v3 = vpop.eup %3070 }
 0x89f   : > { %v3073_v10 = vpop.eup %3072  ;;  %v2162_v11 = vsel %vm1199_vm4, %v3071_v3, 0.0 }
 0x8a0   : > { %2163 = vadd.xlane.f32.xlu1 %v2162_v11  ;;  %v2159_v13 = vsel %vm1199_vm4, %v3073_v10, 0.0 }
 0x8a1   : > { %2160 = vadd.xlane.f32.xlu0 %v2159_v13 }
 0x92d   : > { %v2164_v14 = vpop.xlane.xlu1 %2163 }
 0x92e   : > { %3074 = vrcp.f32 %v2164_v14  ;;  %v2161_v15 = vpop.xlane.xlu0 %2160 }
 0x92f   : > { %3076 = vrcp.f32 %v2161_v15 }
 0x938   : > { %v3075_v20 = vpop.eup %3074 }
 0x939   : > { %v3077_v22 = vpop.eup %3076  ;;  %v2168_v23 = vmul.f32 %v3075_v20, %v3071_v3 }
 0x93a   : > { %v2167_v25 = vmul.f32 %v3077_v22, %v3073_v10 }
 0x93b   : > { %2903 = vmatmul.mubr.msk.f32.vlgmr.msra.gmra.mrb[22].mxu0 %vm1199_vm4, %v2168_v23 }
 0x93c   : > { %2898 = vmatmul.mubr.msk.f32.vlgmr.msra.gmra.mrb[20].mxu1 %vm1199_vm4, %v2167_v25  ;;  %3011 = vmatpush3.bf16.msra.mxu0 %v3010_v21 }
 0x93d   : > { %3008 = vmatpush3.bf16.msra.mxu1 %v3007_v24  ;;  %2909 = vmatprep.mubr.msk.f32.mxu1 %vm3143_vm0, %v3144_v6 }
 0x93e   : > { %2916 = vmatprep.mubr.msk.f32.mxu0 %vm3143_vm0, %v3144_v6  ;;  %v2604_v6 = vld [vmem:[%s3692_s13] ss:$0 sm:$0xff] }
 0xa0e   : > { %v2311_v26 = vpop.f32.mrb[22].mxu0 }
 0xa0f   : > { %v2238_v27 = vpop.f32.mrb[20].mxu1  ;;  %v2904_v28 = vpop.f32.mrb[23].mxu0  ;;  %2917 = vmatmul.mubr.msk.f32.vlgmr.msra.gmra.mrb[24].mxu0 %vm1044_vm3, %v2311_v26 }
 0xa10   : > { %v2899_v29 = vpop.f32.mrb[21].mxu1  ;;  %2910 = vmatmul.mubr.msk.f32.vlgmr.msra.gmra.mrb[22].mxu1 %vm1044_vm3, %v2238_v27 }
 0xae2   : > { %v2461_v30 = vpop.f32.mrb[24].mxu0 }
 0xae3   : > { %v2388_v31 = vpop.f32.mrb[22].mxu1  ;;  %v2466_v32 = vsel %vm577_vm1, %v2461_v30, 0.0  ;;  %v2918_v33 = vpop.f32.mrb[25].mxu0 }
 0xae4   : > { %v2465_v34 = vsel %vm577_vm1, %v2388_v31, 0.0  ;;  %v2911_v35 = vpop.f32.mrb[23].mxu1 }
 0xae5   : > { %v2467_v36 = vadd.f32 %v2466_v32, %v2465_v34 }
 0xae7   : > { %v2475_v37 = vadd.f32 %v2604_v6, %v2467_v36 }
 0xae9   : > { %v2476_v38 = vadd.f32 %v2475_v37, %v3474_v62 }
 0xaeb   : > { %2477 = vst.msk [vmem:[%s471_s26] sm:$0xff] %vm577_vm1, %v2476_v38 }
 0xaec   : > { %3091 = shalt.err (!%p3088_p3)
}
 0xaed   : > { %s3092_s15 = scalar_lea.hbm %s3636_s18, 128  ;;  %s3096_s26 = scalar_lea.hbm %s3693_s14, 256 }
 0xaee   : > { %p3093_p4 = scmp.ne.s32.totalorder %s3636_s18, %s3092_s15  ;;  %p3097_p9 = scmp.lt.u32.totalorder %s3636_s18, %s3693_s14 }
 0xaef   : > { %p3098_p10 = scmp.lt.u32.totalorder %s3096_s26, %s3092_s15  ;;  %p3100_p12 = scmp.lt.u32.totalorder %s3092_s15, %s3636_s18 }
 0xaf0   : > { %p3094_p7 = pnand %p3093_p4, %p3259_p5 }
 0xaf1   : > { %p3099_p11 = por %p3098_p10, %p3097_p9 }
 0xaf2   : > { %p3095_p8 = pneg %p3094_p7 }
 0xaf3   : > { %p3101_p13 = por %p3100_p12, %p3099_p11 }
 0xaf5   : > { %p3102_p0 = pnand %p3101_p13, %p3095_p8 }
 0xaf7   : > { %3105 = shalt.err (!%p3102_p0)
}
 0xaf8   : > { %3012 = dma.vmem_to_hbm [thread:$0]  (%p3259_p5), %s3638_s27, 128, %s3636_s18, %s2479_s20  }
 0xaf9 PF: > { %s3706_s21 = sld [smem:[#allocation5_spill]]  ;;  %p3018_p1 = scmp.ge.s32.totalorder %s3140_s16, 2 }
 0xafb   : > { %p3015_p2 = pnand %p3018_p1, %p3263_p6 }
 0xaff   : > { %s2504_s29 = sand.u32 1, %s3706_s21  }
 0xb00   : > { %s2505_s19 = scalar_lea.sflag [#allocation3], %s2504_s29 }
 0xb01   : > { %3123 = dma.done.wait (!%p3015_p2), %s2505_s19, 128  }
 0xb02   : > { %3125 = vsyncadd (!%p3015_p2), %s2505_s19, 4294967168  ;;  %s3708_s16 = sld [smem:[#allocation7_spill]]  ;;  %s3709_s15 = sld [smem:[#allocation6_spill]] }
 0xb03   : > { %s3710_s24 = sld [smem:[#allocation8_spill]]  ;;  %s3711_s29 = smov %s3132_s30 }
 0xb08   : > { %p24_p3 = scmp.ge.s32.totalorder %s3708_s16, 4   ;;  %s3712_s30 = smov %s3709_s15 }
 0xb09   : > { %s3713_s15 = smov %s3710_s24 }
 0xb0a   :  { %26 = sbr.rel (!%p24_p3) target bundleno = 3 (0x3), region = 114 }
 0xb11   :  { %2510 = vsyncpa [#allocation3], 1 }
 0xb12   :  { %2512 = vsyncpa [#allocation3 + $0x1], 1 }

</bundles_post_ra>
